<compile_context>
chip_gen: v6e
topology: v6e:2x2x1
jax: 0.10.0
libtpu: 0.0.40
codegen_flags: <defaults>
</compile_context>

<pallas_src>
import jax
import jax.numpy as jnp
from jax.experimental import pallas as pl
from jax.experimental.pallas import tpu as pltpu


def _round_up(x, m):
    return -(-x // m) * m


def dam_kernel(xi_ref, xo_ref, wi_ref, wo_ref, bi_ref, bo_ref,
               mix_img_ref, mix_omic_ref):
    Dp = mix_img_ref.shape[-1]

    # y = x @ W^T + (b + 1): one wide (tm, Dp) x (Dp, 2Dp) bf16 matmul per
    # modality (f32 accumulation), plus one wide f32 bias add each.
    yi = jnp.dot(xi_ref[...], wi_ref[...],
                 preferred_element_type=jnp.float32) + bi_ref[...]
    yo = jnp.dot(xo_ref[...], wo_ref[...],
                 preferred_element_type=jnp.float32) + bo_ref[...]

    # chunk(2, dim=-1): lane-aligned static slices (Dp % 128 == 0 by construction).
    head_image, tail_image = yi[:, :Dp], yi[:, Dp:]
    head_omic, tail_omic = yo[:, :Dp], yo[:, Dp:]

    # a*b + a + b == (a+1)(b+1) - 1 ; the +1 was folded into the biases.
    mix_img_ref[...] = (head_omic * tail_image - 1.0).astype(mix_img_ref.dtype)
    mix_omic_ref[...] = (head_image * tail_omic - 1.0).astype(mix_omic_ref.dtype)


def dam_prepare_params(w_i, b_i, w_o, b_o, *, compute_dtype=jnp.bfloat16):
    """One-time parameter prep (call at module init, NOT per forward call).

    w_i, w_o: (2D, D) PyTorch nn.Linear layout; b_i, b_o: (2D,).
    Returns (wi_t, bi, wo_t, bo):
      wi_t, wo_t : (Dp, 2*Dp) = W.T, lane-padded to Dp = round_up(D, 128),
                   cast to `compute_dtype`; head cols [0:Dp], tail cols [Dp:2Dp].
      bi, bo     : (1, 2*Dp) float32 biases with +1.0 folded in
                   (a*b + a + b == (a+1)(b+1) - 1).
    """
    two_d, D = w_i.shape
    assert two_d == 2 * D and w_o.shape == (2 * D, D)
    assert b_i.shape == (2 * D,) and b_o.shape == (2 * D,)
    Dp = _round_up(D, 128)

    def prep(w, b):
        wt = w.T  # (D, 2D); cols [0:D] = head half, [D:2D] = tail half
        if Dp == D:
            wt_p, b_p = wt, b
        else:
            wt_p = jnp.zeros((Dp, 2 * Dp), w.dtype)
            wt_p = wt_p.at[:D, :D].set(wt[:, :D])
            wt_p = wt_p.at[:D, Dp:Dp + D].set(wt[:, D:])
            b_p = jnp.zeros((2 * Dp,), b.dtype)
            b_p = b_p.at[:D].set(b[:D]).at[Dp:Dp + D].set(b[D:])
        wt_p = wt_p.astype(compute_dtype)
        b_p = (b_p.astype(jnp.float32) + 1.0).reshape(1, 2 * Dp)
        return wt_p, b_p

    wi_t, bi = prep(w_i, b_i)
    wo_t, bo = prep(w_o, b_o)
    return wi_t, bi, wo_t, bo


def _pick_tm(B, Dp, in_isz, out_isz, w_bufs, vmem_budget=20 << 20):
    # Small batches: one full-extent block (no pipeline prologue/epilogue; a
    # full-dim block is exempt from the multiple-of-8 sublane rule).
    if B <= 256:
        return B
    # Larger batches: at least 2 grid steps so the "parallel" batch axis can
    # shard across both TensorCores on v7x; cap at 512 rows, then shrink until
    # the per-step working set fits a conservative VMEM budget (safe for the
    # 32 MiB default scoped limit on v5e/v6e/v7x).
    tm = min(512, _round_up(pl.cdiv(B, 2), 8))
    while tm > 8:
        vmem = (2 * 2 * tm * Dp * in_isz              # two inputs, double-buffered
                + 2 * 2 * tm * Dp * out_isz           # two outputs, double-buffered
                + w_bufs * 2 * Dp * 2 * Dp * in_isz   # two weight matrices
                + 2 * tm * 2 * Dp * 4)                # two (tm, 2Dp) f32 intermediates
        if vmem <= vmem_budget:
            break
        tm = max(8, _round_up(tm // 2, 8))
    return tm


def dam_forward(x_i, x_o, wi_t, bi, wo_t, bo, *, tm=None):
    """x_i, x_o: (B, D). wi_t/bi/wo_t/bo: outputs of dam_prepare_params."""
    B, D = x_i.shape
    Dp = wi_t.shape[0]
    out_dtype = x_i.dtype
    compute_dtype = wi_t.dtype

    # bf16 inputs for the MXU; lane-pad the feature dim only when D is not a
    # multiple of 128 (documented fallback so the head/tail split stays free).
    xi = x_i.astype(compute_dtype)
    xo = x_o.astype(compute_dtype)
    if Dp != D:
        xi = jnp.pad(xi, ((0, 0), (0, Dp - D)))
        xo = jnp.pad(xo, ((0, 0), (0, Dp - D)))

    in_isz = jnp.dtype(compute_dtype).itemsize
    out_isz = jnp.dtype(out_dtype).itemsize

    # Grid-invariant weights: nothing to pipeline (constant index_map), so
    # single-buffer them once they are big enough to matter for VMEM.
    weight_bytes = 2 * Dp * 2 * Dp * in_isz
    single_buffer_w = weight_bytes >= (4 << 20)
    w_bufs = 1 if single_buffer_w else 2

    if tm is None:
        tm = _pick_tm(B, Dp, in_isz, out_isz, w_bufs)
    else:
        # Clamp/round a caller-provided tm to respect the (8,128) sublane rule.
        tm = min(tm, B)
        if tm < B:
            tm = max(8, (tm // 8) * 8)
    grid = (pl.cdiv(B, tm),)  # ragged last block handled by Pallas (no jnp.pad)

    x_spec = pl.BlockSpec((tm, Dp), lambda m: (m, 0))
    out_spec = pl.BlockSpec((tm, Dp), lambda m: (m, 0))
    if single_buffer_w:
        w_spec = pl.BlockSpec((Dp, 2 * Dp), lambda m: (0, 0),
                              pipeline_mode=pl.Buffered(1))
        b_spec = pl.BlockSpec((1, 2 * Dp), lambda m: (0, 0),
                              pipeline_mode=pl.Buffered(1))
    else:
        w_spec = pl.BlockSpec((Dp, 2 * Dp), lambda m: (0, 0))
        b_spec = pl.BlockSpec((1, 2 * Dp), lambda m: (0, 0))

    cost = pl.CostEstimate(
        flops=2 * 2 * B * Dp * (2 * Dp),             # two (B,Dp)x(Dp,2Dp) matmuls
        transcendentals=0,
        bytes_accessed=(2 * B * Dp * in_isz          # x_i, x_o in (bf16)
                        + weight_bytes               # two weight matrices
                        + 2 * 2 * Dp * 4             # two biases (f32)
                        + 2 * B * Dp * out_isz))     # two outputs

    # TODO(synk): for very large D (weights alone exceeding VMEM) add a second
    # grid axis over the 2*Dp output columns; unnecessary for typical in_dim.
    mix_image, mix_omic = pl.pallas_call(
        dam_kernel,
        out_shape=(jax.ShapeDtypeStruct((B, Dp), out_dtype),
                   jax.ShapeDtypeStruct((B, Dp), out_dtype)),
        grid=grid,
        in_specs=[x_spec, x_spec, w_spec, w_spec, b_spec, b_spec],
        out_specs=(out_spec, out_spec),
        compiler_params=pltpu.CompilerParams(
            dimension_semantics=("parallel",)),
        cost_estimate=cost,
    )(xi, xo, wi_t, wo_t, bi, bo)

    if Dp != D:
        mix_image = mix_image[:, :D]
        mix_omic = mix_omic[:, :D]
    return mix_image, mix_omic


def dam_reference(x_i, x_o, w_i, b_i, w_o, b_o, *, compute_dtype=jnp.float32):
    """Plain-JAX reference mirroring the PyTorch forward (optionally with the
    same bf16-matmul numerics as the kernel)."""
    xi = x_i.astype(compute_dtype)
    xo = x_o.astype(compute_dtype)
    wi = w_i.astype(compute_dtype)
    wo = w_o.astype(compute_dtype)
    yi = jnp.dot(xi, wi.T, preferred_element_type=jnp.float32) + b_i
    yo = jnp.dot(xo, wo.T, preferred_element_type=jnp.float32) + b_o
    D = x_i.shape[-1]
    head_image, tail_image = yi[:, :D], yi[:, D:]
    head_omic, tail_omic = yo[:, :D], yo[:, D:]
    mix_image = head_omic * tail_image + (tail_image + head_omic)
    mix_omic = head_image * tail_omic + (tail_omic + head_image)
    return mix_image, mix_omic


def _run_case(B, D, key):
    k_xi, k_xo, k_wi, k_bi, k_wo, k_bo = jax.random.split(key, 6)
    x_i = jax.random.normal(k_xi, (B, D), dtype=jnp.float32)
    x_o = jax.random.normal(k_xo, (B, D), dtype=jnp.float32)

    # nn.Linear(in_dim, 2*in_dim) parameter shapes: weight (2D, D), bias (2D,),
    # uniform(-1/sqrt(D), 1/sqrt(D)).
    bound = 1.0 / (D ** 0.5)
    w_i = jax.random.uniform(k_wi, (2 * D, D), jnp.float32, -bound, bound)
    b_i = jax.random.uniform(k_bi, (2 * D,), jnp.float32, -bound, bound)
    w_o = jax.random.uniform(k_wo, (2 * D, D), jnp.float32, -bound, bound)
    b_o = jax.random.uniform(k_bo, (2 * D,), jnp.float32, -bound, bound)

    params = dam_prepare_params(w_i, b_i, w_o, b_o)      # one-time (init) prep
    mix_image, mix_omic = jax.jit(dam_forward)(x_i, x_o, *params)
    jax.block_until_ready((mix_image, mix_omic))
    assert mix_image.shape == (B, D) and mix_omic.shape == (B, D)

    # Tight check against a reference with the same bf16-matmul numerics.
    ref_i_bf, ref_o_bf = dam_reference(x_i, x_o, w_i, b_i, w_o, b_o,
                                       compute_dtype=jnp.bfloat16)
    assert jnp.allclose(mix_image, ref_i_bf, atol=2e-3, rtol=2e-3)
    assert jnp.allclose(mix_omic, ref_o_bf, atol=2e-3, rtol=2e-3)

    # Re-baselined (looser) check vs. the exact f32 PyTorch-semantics reference.
    ref_i, ref_o = dam_reference(x_i, x_o, w_i, b_i, w_o, b_o)
    assert jnp.allclose(mix_image, ref_i, atol=1e-1, rtol=1e-1)
    assert jnp.allclose(mix_omic, ref_o, atol=1e-1, rtol=1e-1)


if __name__ == "__main__":
    key = jax.random.PRNGKey(0)
    cases = [
        (8, 128),    # primary small case: single full-extent block, grid=(1,)
        (12, 128),   # batch not a multiple of 8: full-array block path
        (8, 96),     # feature dim not a multiple of 128: lane-padding fallback
        (260, 128),  # multi-step grid with a ragged last block (no jnp.pad)
    ]
    for idx, (B, D) in enumerate(cases):
        _run_case(B, D, jax.random.fold_in(key, idx))

    print("KERNEL_OK")
</pallas_src>

<mosaic_0001>
module attributes {stable_mosaic.version = 11 : i64} {
  func.func @dam_kernel(%arg0: i32, %arg1: memref<8x128xbf16, #tpu.memory_space<vmem>>, %arg2: memref<8x128xbf16, #tpu.memory_space<vmem>>, %arg3: memref<128x256xbf16, #tpu.memory_space<vmem>>, %arg4: memref<128x256xbf16, #tpu.memory_space<vmem>>, %arg5: memref<1x256xf32, #tpu.memory_space<vmem>>, %arg6: memref<1x256xf32, #tpu.memory_space<vmem>>, %arg7: memref<8x128xf32, #tpu.memory_space<vmem>>, %arg8: memref<8x128xf32, #tpu.memory_space<vmem>>) attributes {dimension_semantics = [#tpu.dimension_semantics<parallel>], iteration_bounds = array<i64: 1>, scalar_prefetch = 0 : i64, scratch_operands = 0 : i64, tpu.core_type = #tpu.core_type<tc>, window_params = [{transform_indices = @transform_0, window_bounds = array<i64: 8, 128>}, {transform_indices = @transform_1, window_bounds = array<i64: 8, 128>}, {pipeline_mode = #tpu.pipeline_mode<synchronous>, transform_indices = @transform_2, window_bounds = array<i64: 128, 256>}, {pipeline_mode = #tpu.pipeline_mode<synchronous>, transform_indices = @transform_3, window_bounds = array<i64: 128, 256>}, {pipeline_mode = #tpu.pipeline_mode<synchronous>, transform_indices = @transform_4, window_bounds = array<i64: 1, 256>}, {pipeline_mode = #tpu.pipeline_mode<synchronous>, transform_indices = @transform_5, window_bounds = array<i64: 1, 256>}, {transform_indices = @transform_6, window_bounds = array<i64: 8, 128>}, {transform_indices = @transform_7, window_bounds = array<i64: 8, 128>}]} {
    %c0 = arith.constant 0 : index
    %c0_0 = arith.constant 0 : index
    %0 = vector.load %arg1[%c0, %c0_0] : memref<8x128xbf16, #tpu.memory_space<vmem>>, vector<8x128xbf16>
    %c0_1 = arith.constant 0 : index
    %c0_2 = arith.constant 0 : index
    %1 = vector.load %arg3[%c0_1, %c0_2] : memref<128x256xbf16, #tpu.memory_space<vmem>>, vector<128x256xbf16>
    %cst = arith.constant dense<0.000000e+00> : vector<8x256xf32>
    %2 = tpu.matmul %0, %1, %cst {dimension_numbers = #tpu.dot_dimension_numbers<[1], [0], [0], [1], [0, 0, 1, 1], [], []>} : vector<8x128xbf16>, vector<128x256xbf16>, vector<8x256xf32> -> vector<8x256xf32>
    %c0_3 = arith.constant 0 : index
    %c0_4 = arith.constant 0 : index
    %3 = vector.load %arg5[%c0_3, %c0_4] : memref<1x256xf32, #tpu.memory_space<vmem>>, vector<1x256xf32>
    %4 = vector.broadcast %3 : vector<1x256xf32> to vector<8x256xf32>
    %5 = arith.addf %2, %4 : vector<8x256xf32>
    %c0_5 = arith.constant 0 : index
    %c0_6 = arith.constant 0 : index
    %6 = vector.load %arg2[%c0_5, %c0_6] : memref<8x128xbf16, #tpu.memory_space<vmem>>, vector<8x128xbf16>
    %c0_7 = arith.constant 0 : index
    %c0_8 = arith.constant 0 : index
    %7 = vector.load %arg4[%c0_7, %c0_8] : memref<128x256xbf16, #tpu.memory_space<vmem>>, vector<128x256xbf16>
    %cst_9 = arith.constant dense<0.000000e+00> : vector<8x256xf32>
    %8 = tpu.matmul %6, %7, %cst_9 {dimension_numbers = #tpu.dot_dimension_numbers<[1], [0], [0], [1], [0, 0, 1, 1], [], []>} : vector<8x128xbf16>, vector<128x256xbf16>, vector<8x256xf32> -> vector<8x256xf32>
    %c0_10 = arith.constant 0 : index
    %c0_11 = arith.constant 0 : index
    %9 = vector.load %arg6[%c0_10, %c0_11] : memref<1x256xf32, #tpu.memory_space<vmem>>, vector<1x256xf32>
    %10 = vector.broadcast %9 : vector<1x256xf32> to vector<8x256xf32>
    %11 = arith.addf %8, %10 : vector<8x256xf32>
    %12 = vector.extract_strided_slice %5 {offsets = [0, 0], sizes = [8, 128], strides = [1, 1]} : vector<8x256xf32> to vector<8x128xf32>
    %13 = vector.extract_strided_slice %5 {offsets = [0, 128], sizes = [8, 128], strides = [1, 1]} : vector<8x256xf32> to vector<8x128xf32>
    %14 = vector.extract_strided_slice %11 {offsets = [0, 0], sizes = [8, 128], strides = [1, 1]} : vector<8x256xf32> to vector<8x128xf32>
    %15 = vector.extract_strided_slice %11 {offsets = [0, 128], sizes = [8, 128], strides = [1, 1]} : vector<8x256xf32> to vector<8x128xf32>
    %16 = arith.mulf %14, %13 : vector<8x128xf32>
    %cst_12 = arith.constant 1.000000e+00 : f32
    %17 = vector.broadcast %cst_12 : f32 to vector<8x128xf32>
    %18 = arith.subf %16, %17 : vector<8x128xf32>
    %c0_13 = arith.constant 0 : index
    %c0_14 = arith.constant 0 : index
    %19 = vector.load %arg7[%c0_13, %c0_14] : memref<8x128xf32, #tpu.memory_space<vmem>>, vector<8x128xf32>
    tpu.vector_store %arg7[%c0_13, %c0_14], %18 {strides = array<i32>} : memref<8x128xf32, #tpu.memory_space<vmem>>, vector<8x128xf32>,
    %20 = arith.mulf %12, %15 : vector<8x128xf32>
    %cst_15 = arith.constant 1.000000e+00 : f32
    %21 = vector.broadcast %cst_15 : f32 to vector<8x128xf32>
    %22 = arith.subf %20, %21 : vector<8x128xf32>
    %c0_16 = arith.constant 0 : index
    %c0_17 = arith.constant 0 : index
    %23 = vector.load %arg8[%c0_16, %c0_17] : memref<8x128xf32, #tpu.memory_space<vmem>>, vector<8x128xf32>
    tpu.vector_store %arg8[%c0_16, %c0_17], %22 {strides = array<i32>} : memref<8x128xf32, #tpu.memory_space<vmem>>, vector<8x128xf32>,
    return
  }
  func.func @transform_0(%arg0: i32) -> (i32, i32) {
    %c0_i32 = arith.constant 0 : i32
    %c0_i32_0 = arith.constant 0 : i32
    return %arg0, %c0_i32 : i32, i32
  }
  func.func @transform_1(%arg0: i32) -> (i32, i32) {
    %c0_i32 = arith.constant 0 : i32
    %c0_i32_0 = arith.constant 0 : i32
    return %arg0, %c0_i32 : i32, i32
  }
  func.func @transform_2(%arg0: i32) -> (i32, i32) {
    %c0_i32 = arith.constant 0 : i32
    %c0_i32_0 = arith.constant 0 : i32
    %c0_i32_1 = arith.constant 0 : i32
    return %c0_i32, %c0_i32_0 : i32, i32
  }
  func.func @transform_3(%arg0: i32) -> (i32, i32) {
    %c0_i32 = arith.constant 0 : i32
    %c0_i32_0 = arith.constant 0 : i32
    %c0_i32_1 = arith.constant 0 : i32
    return %c0_i32, %c0_i32_0 : i32, i32
  }
  func.func @transform_4(%arg0: i32) -> (i32, i32) {
    %c0_i32 = arith.constant 0 : i32
    %c0_i32_0 = arith.constant 0 : i32
    %c0_i32_1 = arith.constant 0 : i32
    return %c0_i32, %c0_i32_0 : i32, i32
  }
  func.func @transform_5(%arg0: i32) -> (i32, i32) {
    %c0_i32 = arith.constant 0 : i32
    %c0_i32_0 = arith.constant 0 : i32
    %c0_i32_1 = arith.constant 0 : i32
    return %c0_i32, %c0_i32_0 : i32, i32
  }
  func.func @transform_6(%arg0: i32) -> (i32, i32) {
    %c0_i32 = arith.constant 0 : i32
    %c0_i32_0 = arith.constant 0 : i32
    return %arg0, %c0_i32 : i32, i32
  }
  func.func @transform_7(%arg0: i32) -> (i32, i32) {
    %c0_i32 = arith.constant 0 : i32
    %c0_i32_0 = arith.constant 0 : i32
    return %arg0, %c0_i32 : i32, i32
  }
}

</mosaic_0001>

<bundles_post_ra>
// kernel: dam_forward.1
= control target key start
LH: loop header
LB: loop body
LE: loop exit
PB: predicated region body
PF: predicated region fallthrough
CT: control target
= control target key end

     0   :  { %13 = vsyncpa [#allocation3], 0  ;;  %s640_s0 = inlined_call_operand.vmem [shape: bf16[8,128], index: 0, kind: input, shape index: {}]   ;;  %s641_s1 = inlined_call_operand.vmem [shape: bf16[8,128], index: 1, kind: input, shape index: {}]   ;;  %s642_s2 = inlined_call_operand.hbm [shape: bf16[128,256], index: 2, kind: input, shape index: {}]   ;;  %s643_s3 = inlined_call_operand.hbm [shape: bf16[128,256], index: 3, kind: input, shape index: {}]   ;;  %s644_s4 = inlined_call_operand.vmem [shape: f32[1,256], index: 4, kind: input, shape index: {}]   ;;  %s645_s5 = inlined_call_operand.vmem [shape: f32[1,256], index: 5, kind: input, shape index: {}]   ;;  %s646_s6 = inlined_call_operand.hbm [shape: f32[8,128], index: 6, kind: output, shape index: {0}]   ;;  %s647_s7 = inlined_call_operand.hbm [shape: f32[8,128], index: 7, kind: output, shape index: {1}]  }
   0x1   :  { %14 = vsyncpa [#allocation6], 0 }
   0x2   :  { %15 = vsyncpa [#allocation4], 0 }
   0x3   :  { %16 = vsyncpa [#allocation9], 0  ;;  %s569_s24 = smov [#allocation2]  }
   0x4   :  { %s26_s25 = sshll.u32 %s569_s24, 4  ;;  %s27_s25 = int_to_ptr.vmem [resolvable:$true] %s26_s25 }
   0x5   :  { %s489_s26 = scalar_lea.vmem %s27_s25, 2048  ;;  %p494_p1 = scmp.lt.s32.totalorder %s27_s25, %s27_s25 }
   0x6   :  { %p490_p0 = scmp.ne.s32.totalorder %s27_s25, %s489_s26  ;;  %p495_p2 = scmp.lt.s32.totalorder %s489_s26, %s489_s26 }
   0x8   :  { %p496_p3 = por %p495_p2, %p494_p1 }
   0xa   :  { %p497_p4 = pnand %p496_p3, %p490_p0 }
   0xc   :  { %500 = shalt.err (!%p497_p4)
}
   0xd   :  { %s570_s27 = smov 128   ;;  %s571_s28 = smov 8  }
   0xe   :  { %32 = dma.hbm_to_vmem [thread:$0]  %s642_s2, 2048, %s27_s25, [#allocation3], %s570_s27, %s570_s27, %s571_s28  }
   0xf   :  { %s572_s8 = smov [#allocation5]  }
  0x10   :  { %s38_s9 = sshll.u32 %s572_s8, 4  ;;  %s39_s9 = int_to_ptr.vmem [resolvable:$true] %s38_s9 }
  0x11   :  { %s509_s10 = scalar_lea.vmem %s39_s9, 2048  ;;  %p514_p6 = scmp.lt.s32.totalorder %s39_s9, %s39_s9 }
  0x12   :  { %p510_p5 = scmp.ne.s32.totalorder %s39_s9, %s509_s10  ;;  %p515_p7 = scmp.lt.s32.totalorder %s509_s10, %s509_s10 }
  0x14   :  { %p516_p8 = por %p515_p7, %p514_p6 }
  0x16   :  { %p517_p9 = pnand %p516_p8, %p510_p5 }
  0x18   :  { %520 = shalt.err (!%p517_p9)
}
  0x19   :  { %44 = dma.hbm_to_vmem [thread:$0]  %s643_s3, 2048, %s39_s9, [#allocation6], %s570_s27, %s570_s27, %s571_s28  }
  0x1a   :  { %561 = dma.done.wait [#allocation3], 2048  }
  0x1b   :  { %562 = vsyncadd [#allocation3], 4294965248 }
  0x1c   :  { %563 = dma.done.wait [#allocation6], 2048  }
  0x1d   :  { %564 = vsyncadd [#allocation6], 4294965248  ;;  %v573_v0 = vmov 0   ;;  %v433_v1 = vld [vmem:[#allocation2 + $0x74] ss:$8 sps:$4 sm:$0xff]   ;;  %v75_v35 = vlaneseq }
  0x1e   :  { %197 = vmatprep.mubr.bf16.mxu0 %v573_v0  ;;  %347 = vmatprep.mubr.bf16.mxu1 %v573_v0  ;;  %v435_v2 = vld [vmem:[#allocation5 + $0x74] ss:$8 sps:$4 sm:$0xff]   ;;  %v437_v3 = vld [vmem:[#allocation2 + $0x70] ss:$8 sps:$4 sm:$0xff]   ;;  %v439_v5 = vld [vmem:[#allocation2 + $0x64] ss:$8 sps:$4 sm:$0xff]  }
  0x1f   :  { %165 = vmatprep.subr.bf16.mxu0 %v433_v1  ;;  %v438_v4 = vld [vmem:[#allocation5 + $0x70] ss:$8 sps:$4 sm:$0xff]   ;;  %315 = vmatprep.subr.bf16.mxu1 %v435_v2  ;;  %v441_v6 = vld [vmem:[#allocation5 + $0x64] ss:$8 sps:$4 sm:$0xff]   ;;  %v443_v7 = vld [vmem:[#allocation2 + $0x60] ss:$8 sps:$4 sm:$0xff]  }
  0x20   :  { %166 = vmatpush1.bf16.msra.mxu0 %v437_v3  ;;  %316 = vmatpush1.bf16.msra.mxu1 %v438_v4  ;;  %v444_v8 = vld [vmem:[#allocation5 + $0x60] ss:$8 sps:$4 sm:$0xff]   ;;  %v445_v9 = vld [vmem:[#allocation2 + $0x54] ss:$8 sps:$4 sm:$0xff]   ;;  %v449_v11 = vld [vmem:[#allocation2 + $0x50] ss:$8 sps:$4 sm:$0xff]  }
  0x21   :  { %167 = vmatprep.subr.bf16.mxu0 %v439_v5  ;;  %317 = vmatprep.subr.bf16.mxu1 %v441_v6  ;;  %v447_v10 = vld [vmem:[#allocation5 + $0x54] ss:$8 sps:$4 sm:$0xff]   ;;  %v450_v12 = vld [vmem:[#allocation5 + $0x50] ss:$8 sps:$4 sm:$0xff]   ;;  %v451_v13 = vld [vmem:[#allocation2 + $0x44] ss:$8 sps:$4 sm:$0xff]  }
  0x22   :  { %v453_v14 = vld [vmem:[#allocation5 + $0x44] ss:$8 sps:$4 sm:$0xff]   ;;  %v455_v15 = vld [vmem:[#allocation2 + $0x40] ss:$8 sps:$4 sm:$0xff]   ;;  %v457_v17 = vld [vmem:[#allocation2 + $0x34] ss:$8 sps:$4 sm:$0xff]  }
  0x23   :  { %v456_v16 = vld [vmem:[#allocation5 + $0x40] ss:$8 sps:$4 sm:$0xff]   ;;  %v459_v18 = vld [vmem:[#allocation5 + $0x34] ss:$8 sps:$4 sm:$0xff]   ;;  %v461_v19 = vld [vmem:[#allocation2 + $0x30] ss:$8 sps:$4 sm:$0xff]  }
  0x24   :  { %168 = vmatpush1.bf16.msra.mxu0 %v443_v7  ;;  %318 = vmatpush1.bf16.msra.mxu1 %v444_v8  ;;  %v462_v20 = vld [vmem:[#allocation5 + $0x30] ss:$8 sps:$4 sm:$0xff]   ;;  %v463_v21 = vld [vmem:[#allocation2 + $0x24] ss:$8 sps:$4 sm:$0xff]   ;;  %v467_v23 = vld [vmem:[#allocation2 + $0x20] ss:$8 sps:$4 sm:$0xff]  }
  0x25   :  { %169 = vmatprep.subr.bf16.mxu0 %v445_v9  ;;  %319 = vmatprep.subr.bf16.mxu1 %v447_v10  ;;  %v465_v22 = vld [vmem:[#allocation5 + $0x24] ss:$8 sps:$4 sm:$0xff]   ;;  %v468_v24 = vld [vmem:[#allocation5 + $0x20] ss:$8 sps:$4 sm:$0xff]   ;;  %v469_v25 = vld [vmem:[#allocation2 + $0x14] ss:$8 sps:$4 sm:$0xff]  }
  0x26   :  { %v471_v26 = vld [vmem:[#allocation5 + $0x14] ss:$8 sps:$4 sm:$0xff]   ;;  %v473_v27 = vld [vmem:[#allocation2 + $0x10] ss:$8 sps:$4 sm:$0xff]   ;;  %v475_v29 = vld [vmem:[#allocation2 + $0x4] ss:$8 sps:$4 sm:$0xff]  }
  0x27   :  { %v474_v28 = vld [vmem:[#allocation5 + $0x10] ss:$8 sps:$4 sm:$0xff]   ;;  %v477_v30 = vld [vmem:[#allocation5 + $0x4] ss:$8 sps:$4 sm:$0xff]   ;;  %v479_v31 = vld [vmem:[#allocation2] ss:$8 sps:$4 sm:$0xff]  }
  0x28   :  { %170 = vmatpush1.bf16.msra.mxu0 %v449_v11  ;;  %320 = vmatpush1.bf16.msra.mxu1 %v450_v12  ;;  %v480_v32 = vld [vmem:[#allocation5] ss:$8 sps:$4 sm:$0xff]   ;;  %v76_v36 = vshrl.u32 %v75_v35, 7 }
  0x29   :  { %171 = vmatprep.subr.bf16.mxu0 %v451_v13  ;;  %321 = vmatprep.subr.bf16.mxu1 %v453_v14  ;;  %v56_v33 = vld [vmem:[%s640_s0] sm:$0xf]  ;;  %s574_s0 = smov [#allocation7]  }
  0x2a   :  { %v206_v34 = vld [vmem:[%s641_s1] sm:$0xf]  ;;  %v77_v37 = vsub.s32 0, %v76_v36  ;;  %v81_v38 = vsub.s32 1, %v76_v36  ;;  %s368_s1 = sshll.u32 %s574_s0, 4  ;;  %s369_s1 = int_to_ptr.vmem [resolvable:$true] %s368_s1 }
  0x2b   :  { %v73_v39 = vld [vmem:[%s644_s4] sm:$0x3]  ;;  %s575_s4 = smov [#allocation8]   ;;  %s521_s19 = scalar_lea.vmem %s369_s1, 128 }
  0x2c   :  { %172 = vmatpush1.bf16.msra.mxu0 %v455_v15  ;;  %322 = vmatpush1.bf16.msra.mxu1 %v456_v16  ;;  %v223_v40 = vld [vmem:[%s645_s5] sm:$0x3]  ;;  %v78_v41 = vrot.slane %v73_v39, %v77_v37  ;;  %v82_v43 = vrot.slane %v73_v39, %v81_v38  ;;  %s378_s5 = sshll.u32 %s575_s4, 4  ;;  %p522_p10 = scmp.ne.s32.totalorder %s369_s1, %s521_s19  ;;  %s379_s5 = int_to_ptr.vmem [resolvable:$true] %s378_s5 }
  0x2d   :  { %173 = vmatprep.subr.bf16.mxu0 %v457_v17  ;;  %323 = vmatprep.subr.bf16.mxu1 %v459_v18  ;;  %v228_v42 = vrot.slane %v223_v40, %v77_v37  ;;  %v232_v44 = vrot.slane %v223_v40, %v81_v38  ;;  %p526_p11 = scmp.lt.s32.totalorder %s369_s1, %s369_s1  ;;  %p527_p12 = scmp.lt.s32.totalorder %s521_s19, %s521_s19 }
  0x2f   :  { %p528_p13 = por %p527_p12, %p526_p11 }
  0x30   :  { %174 = vmatpush1.bf16.msra.mxu0 %v461_v19  ;;  %324 = vmatpush1.bf16.msra.mxu1 %v462_v20 }
  0x31   :  { %175 = vmatprep.subr.bf16.mxu0 %v463_v21  ;;  %325 = vmatprep.subr.bf16.mxu1 %v465_v22  ;;  %p529_p0 = pnand %p528_p13, %p522_p10 }
  0x34   :  { %176 = vmatpush1.bf16.msra.mxu0 %v467_v23  ;;  %326 = vmatpush1.bf16.msra.mxu1 %v468_v24 }
  0x35   :  { %177 = vmatprep.subr.bf16.mxu0 %v469_v25  ;;  %327 = vmatprep.subr.bf16.mxu1 %v471_v26 }
  0x38   :  { %178 = vmatpush1.bf16.msra.mxu0 %v473_v27  ;;  %328 = vmatpush1.bf16.msra.mxu1 %v474_v28 }
  0x39   :  { %179 = vmatprep.subr.bf16.mxu0 %v475_v29  ;;  %329 = vmatprep.subr.bf16.mxu1 %v477_v30 }
  0x3c   :  { %180 = vmatpush1.bf16.msra.mxu0 %v479_v31  ;;  %330 = vmatpush1.bf16.msra.mxu1 %v480_v32 }
  0x3f   :  { %198 = vmatmul.mubr.bf16.vlgmr.msra.gmra.mxu0 %v56_v33  ;;  %348 = vmatmul.mubr.bf16.vlgmr.msra.gmra.mxu1 %v206_v34 }
  0xff   :  { %v199_v45 = vpop.f32.mrf.mxu0  ;;  %v349_v46 = vpop.f32.mrf.mxu1 }
 0x100   :  { %v200_v49 = vadd.f32 %v199_v45, %v78_v41  ;;  %v350_v50 = vadd.f32 %v349_v46, %v228_v42 }
 0x101   :  { %v201_v47 = vpop.f32.mrf.mxu0  ;;  %v351_v48 = vpop.f32.mrf.mxu1 }
 0x102   :  { %v202_v51 = vadd.f32 %v201_v47, %v82_v43  ;;  %v352_v52 = vadd.f32 %v351_v48, %v232_v44 }
 0x103   :  { %v203_v53 = vpop.f32.mrf.mxu0  ;;  %v353_v54 = vpop.f32.mrf.mxu1 }
 0x104   :  { %v356_v55 = vmul.f32 %v350_v50, %v202_v51  ;;  %v359_v56 = vmul.f32 %v352_v52, %v200_v49 }
 0x105   :  { %v204_v57 = vpop.f32.mrf.mxu0  ;;  %v354_v58 = vpop.f32.mrf.mxu1 }
 0x106   :  { %v424_v59 = vadd.f32 -1.0, %v356_v55  ;;  %v425_v60 = vadd.f32 -1.0, %v359_v56 }
 0x108   :  { %358 = vst [vmem:[#allocation7] sm:$0xff] %v424_v59  ;;  %361 = vst [vmem:[#allocation8] sm:$0xff] %v425_v60 }
 0x109   :  { %532 = shalt.err (!%p529_p0)
}
 0x10a   :  { %371 = dma.vmem_to_hbm [thread:$0]  %s369_s1, 128, %s646_s6, [#allocation4]  }
 0x10b   :  { %s541_s22 = scalar_lea.vmem %s379_s5, 128  ;;  %p546_p2 = scmp.lt.s32.totalorder %s379_s5, %s379_s5 }
 0x10c   :  { %p542_p1 = scmp.ne.s32.totalorder %s379_s5, %s541_s22  ;;  %p547_p3 = scmp.lt.s32.totalorder %s541_s22, %s541_s22 }
 0x10e   :  { %p548_p4 = por %p547_p3, %p546_p2 }
 0x110   :  { %p549_p5 = pnand %p548_p4, %p542_p1 }
 0x112   :  { %552 = shalt.err (!%p549_p5)
}
 0x113   :  { %381 = dma.vmem_to_hbm [thread:$0]  %s379_s5, 128, %s647_s7, [#allocation9]  }
 0x114   :  { %565 = dma.done.wait [#allocation4], 128  }
 0x115   :  { %566 = vsyncadd [#allocation4], 4294967168 }
 0x116   :  { %567 = dma.done.wait [#allocation9], 128  }
 0x117   :  { %568 = vsyncadd [#allocation9], 4294967168 }
 0x118   :  { %388 = vsyncpa [#allocation3], 1 }
 0x119   :  { %389 = vsyncpa [#allocation6], 1 }
 0x11a   :  { %390 = vsyncpa [#allocation4], 1 }
 0x11b   :  { %391 = vsyncpa [#allocation9], 1 }

</bundles_post_ra>
